<compile_context>
chip_gen: v5e
topology: v5e:2x2
jax: 0.10.0
libtpu: 0.0.40
codegen_flags: <defaults>
</compile_context>

<pallas_src>
import math
from functools import partial

import numpy as np
import jax
import jax.numpy as jnp
from jax.experimental import pallas as pl
from jax.experimental.pallas import tpu as pltpu

A = -0.75  # PyTorch's bicubic convolution coefficient


def _cubic1(x):
    # |x| <= 1
    return ((A + 2.0) * x - (A + 3.0)) * x * x + 1.0


def _cubic2(x):
    # 1 < |x| < 2
    return ((A * x - 5.0 * A) * x + 8.0 * A) * x - 4.0 * A


def bicubic_matrix(out_size: int, in_size: int, align_corners: bool = True) -> jnp.ndarray:
    """Dense (out_size, in_size) interpolation matrix matching torch bicubic."""
    o = np.arange(out_size, dtype=np.float64)
    if align_corners:
        scale = 0.0 if out_size <= 1 else (in_size - 1) / (out_size - 1)
        src = o * scale
    else:
        scale = in_size / out_size
        src = (o + 0.5) * scale - 0.5
    i0 = np.floor(src).astype(np.int64)
    t = src - i0
    w = np.stack(
        [_cubic2(t + 1.0), _cubic1(t), _cubic1(1.0 - t), _cubic2(2.0 - t)], axis=1
    )  # (out, 4)
    idx = i0[:, None] + np.arange(-1, 3)[None, :]  # (out, 4)
    idx = np.clip(idx, 0, in_size - 1)             # border replication (clamp)
    W = np.zeros((out_size, in_size), dtype=np.float64)
    for k in range(4):
        np.add.at(W, (np.arange(out_size), idx[:, k]), w[:, k])
    return jnp.asarray(W, dtype=jnp.float32)


# ----------------------------- kernel ---------------------------------------


def _upsample_kernel(x_ref, wh_ref, wwt_ref, o_ref, *, tb):
    # x_ref:   (tb, h_in, w_in)   plane batch
    # wh_ref:  (th, h_in)         row block of the H-direction matrix
    # wwt_ref: (w_in, w_out)      W-direction matrix (already transposed)
    # o_ref:   (tb, th, w_out)    output row block for each plane
    wh = wh_ref[...]
    wwt = wwt_ref[...]
    # Static unroll; tb is bounded by _choose_tiling's max_unroll.  Each plane
    # is two plain 2-D MXU matmuls — no broadcast of Wh, no cross-plane reshape.
    for b in range(tb):
        xb = x_ref[b].astype(jnp.float32)                           # (h_in, w_in)
        s = jnp.dot(wh, xb, preferred_element_type=jnp.float32)     # (th, w_in)
        o_ref[b] = jnp.dot(s, wwt, preferred_element_type=jnp.float32).astype(o_ref.dtype)


# ----------------------- tiling / VMEM sizing --------------------------------


def _pad_to(v, m):
    return ((v + m - 1) // m) * m


def _vmem_limit_bytes():
    """Generation-aware VMEM limit: v7x has 64 MiB/TC, v5e/v6e have 128 MiB."""
    try:
        cap = int(pltpu.get_tpu_info().vmem_capacity_bytes)
    except Exception:
        cap = 64 << 20  # conservative (v7x per-TensorCore)
    if cap <= (64 << 20):
        return 48 << 20                      # v7x: leave headroom under 64 MiB
    return min(96 << 20, (cap * 3) // 4)     # v5e/v6e: raise above scoped default


def _step_vmem_bytes(tb, th, h_in, w_in, w_out, itemsize):
    """Per-grid-step VMEM footprint incl. lane/sublane padding and temporaries."""
    w_in_p = _pad_to(w_in, 128)
    w_out_p = _pad_to(w_out, 128)
    h_in_p = _pad_to(h_in, 8)
    th_p = _pad_to(th, 8)
    in_blk = tb * h_in_p * w_in_p * itemsize          # x block
    out_blk = tb * th_p * w_out_p * itemsize          # o block
    wh_blk = th_p * _pad_to(h_in, 128) * 4            # Wh row block
    wwt_blk = _pad_to(w_in, 8) * w_out_p * 4          # Wwt
    # f32 compute temporaries inside the body (xb cast, s, out), x2 for slack.
    temps = 2 * (h_in_p * w_in_p + th_p * w_in_p + th_p * w_out_p) * 4
    # Inputs/outputs/weights are double-buffered by the BlockSpec pipeline.
    return 2 * (in_blk + out_blk + wh_blk + wwt_blk) + temps


def _choose_tiling(bc, h_in, w_in, h_out, w_out, itemsize, budget, max_unroll=64):
    """Pick (TB planes per step, TH output rows per step) under a VMEM budget."""

    def fits(tb, th):
        return _step_vmem_bytes(tb, th, h_in, w_in, w_out, itemsize) <= budget

    # 1) TH: prefer the full plane; otherwise the largest 8-aligned divisor of
    #    H_out for which a single plane fits (keeps row-block stores aligned).
    start = h_out - (h_out % 8)
    th_options = [t for t in range(start, 0, -8) if h_out % t == 0]
    if not th_options or th_options[0] != h_out:
        th_options = [h_out] + th_options
    th = next((t for t in th_options if fits(1, t)), th_options[-1])

    # 2) TB: largest divisor of BC that fits, capped to bound the static unroll.
    #    Prefer an even plane-grid length (v7x 2-TC balance), then >= 2 steps.
    divs = [d for d in range(1, bc + 1)
            if bc % d == 0 and d <= max_unroll and fits(d, th)]
    if not divs:
        divs = [1]
    even = [d for d in divs if (bc // d) % 2 == 0]
    multi = [d for d in divs if (bc // d) >= 2]
    tb = max(even) if even else (max(multi) if multi else max(divs))
    return tb, th


# ------------------------------ wrapper --------------------------------------


def upsample_bicubic(x: jnp.ndarray, scale_factor=2, size=None, align_corners=True):
    """Pallas equivalent of Upsample(scale_factor=..., mode='bicubic', align_corners=True)."""
    N, C, H_in, W_in = x.shape
    if size is not None:
        H_out, W_out = size
    else:
        sf = scale_factor if isinstance(scale_factor, (tuple, list)) else (scale_factor, scale_factor)
        H_out = int(math.floor(H_in * float(sf[0])))
        W_out = int(math.floor(W_in * float(sf[1])))

    wh = bicubic_matrix(H_out, H_in, align_corners)        # (H_out, H_in)
    wwt = bicubic_matrix(W_out, W_in, align_corners).T     # (W_in, W_out)

    BC = N * C
    vmem_limit = _vmem_limit_bytes()
    budget = max(vmem_limit - (4 << 20), 8 << 20)          # headroom for Mosaic scratch
    TB, TH = _choose_tiling(BC, H_in, W_in, H_out, W_out, x.dtype.itemsize, budget)
    grid = (BC // TB, H_out // TH)

    x3 = x.reshape(BC, H_in, W_in)

    out3 = pl.pallas_call(
        partial(_upsample_kernel, tb=TB),
        out_shape=jax.ShapeDtypeStruct((BC, H_out, W_out), x.dtype),
        grid_spec=pltpu.PrefetchScalarGridSpec(
            num_scalar_prefetch=0,
            grid=grid,
            in_specs=[
                # x block index is constant over the row-block axis -> fetched
                # once per plane batch by the pipeline.
                pl.BlockSpec((TB, H_in, W_in), lambda i, j: (i, 0, 0)),
                pl.BlockSpec((TH, H_in), lambda i, j: (j, 0)),
                pl.BlockSpec((W_in, W_out), lambda i, j: (0, 0)),
            ],
            out_specs=pl.BlockSpec((TB, TH, W_out), lambda i, j: (i, j, 0)),
        ),
        compiler_params=pltpu.CompilerParams(
            dimension_semantics=("parallel", "arbitrary"),
            vmem_limit_bytes=vmem_limit,
        ),
    )(x3, wh, wwt)

    return out3.reshape(N, C, H_out, W_out)


# ------------------------------ reference ------------------------------------


def _reference(x, scale_factor=2, align_corners=True):
    # Pure-JAX reference using the same separable formulation.
    N, C, H_in, W_in = x.shape
    H_out = int(math.floor(H_in * float(scale_factor)))
    W_out = int(math.floor(W_in * float(scale_factor)))
    wh = bicubic_matrix(H_out, H_in, align_corners)
    ww = bicubic_matrix(W_out, W_in, align_corners)
    return jnp.einsum("oh,nchw,pw->ncop", wh, x.astype(jnp.float32), ww).astype(x.dtype)


if __name__ == "__main__":
    key = jax.random.PRNGKey(0)
    x = jax.random.normal(key, (2, 4, 16, 16), dtype=jnp.float32)

    out = upsample_bicubic(x, scale_factor=2, align_corners=True)
    out = jax.block_until_ready(out)

    assert out.shape == (2, 4, 32, 32), out.shape
    ref = _reference(x, scale_factor=2, align_corners=True)
    np.testing.assert_allclose(np.asarray(out), np.asarray(ref), rtol=1e-5, atol=1e-5)

    print("KERNEL_OK")
</pallas_src>

<mosaic_0001>
module attributes {stable_mosaic.version = 11 : i64} {
  func.func @_upsample_kernel(%arg0: i32, %arg1: i32, %arg2: memref<4x16x16xf32, #tpu.memory_space<vmem>>, %arg3: memref<32x16xf32, #tpu.memory_space<vmem>>, %arg4: memref<16x32xf32, #tpu.memory_space<vmem>>, %arg5: memref<4x32x32xf32, #tpu.memory_space<vmem>>) attributes {dimension_semantics = [#tpu.dimension_semantics<parallel>, #tpu.dimension_semantics<arbitrary>], iteration_bounds = array<i64: 2, 1>, scalar_prefetch = 0 : i64, scratch_operands = 0 : i64, tpu.core_type = #tpu.core_type<tc>, window_params = [{transform_indices = @transform_0, window_bounds = array<i64: 4, 16, 16>}, {transform_indices = @transform_1, window_bounds = array<i64: 32, 16>}, {pipeline_mode = #tpu.pipeline_mode<synchronous>, transform_indices = @transform_2, window_bounds = array<i64: 16, 32>}, {transform_indices = @transform_3, window_bounds = array<i64: 4, 32, 32>}]} {
    %c0 = arith.constant 0 : index
    %c0_0 = arith.constant 0 : index
    %0 = vector.load %arg3[%c0, %c0_0] : memref<32x16xf32, #tpu.memory_space<vmem>>, vector<32x16xf32>
    %c0_1 = arith.constant 0 : index
    %c0_2 = arith.constant 0 : index
    %1 = vector.load %arg4[%c0_1, %c0_2] : memref<16x32xf32, #tpu.memory_space<vmem>>, vector<16x32xf32>
    %c0_3 = arith.constant 0 : index
    %c0_4 = arith.constant 0 : index
    %c0_5 = arith.constant 0 : index
    %2 = vector.load %arg2[%c0_3, %c0_4, %c0_5] : memref<4x16x16xf32, #tpu.memory_space<vmem>>, vector<1x16x16xf32>
    %3 = vector.shape_cast %2 : vector<1x16x16xf32> to vector<16x16xf32>
    %cst = arith.constant dense<0.000000e+00> : vector<32x16xf32>
    %4 = tpu.matmul %0, %3, %cst {dimension_numbers = #tpu.dot_dimension_numbers<[1], [0], [0], [1], [0, 0, 1, 1], [], []>} : vector<32x16xf32>, vector<16x16xf32>, vector<32x16xf32> -> vector<32x16xf32>
    %cst_6 = arith.constant dense<0.000000e+00> : vector<32x32xf32>
    %5 = tpu.matmul %4, %1, %cst_6 {dimension_numbers = #tpu.dot_dimension_numbers<[1], [0], [0], [1], [0, 0, 1, 1], [], []>} : vector<32x16xf32>, vector<16x32xf32>, vector<32x32xf32> -> vector<32x32xf32>
    %c0_7 = arith.constant 0 : index
    %c0_8 = arith.constant 0 : index
    %c0_9 = arith.constant 0 : index
    %6 = vector.load %arg5[%c0_7, %c0_8, %c0_9] : memref<4x32x32xf32, #tpu.memory_space<vmem>>, vector<1x32x32xf32>
    %7 = vector.shape_cast %6 : vector<1x32x32xf32> to vector<32x32xf32>
    %8 = vector.shape_cast %5 : vector<32x32xf32> to vector<1x32x32xf32>
    tpu.vector_store %arg5[%c0_7, %c0_8, %c0_9], %8 {strides = array<i32>} : memref<4x32x32xf32, #tpu.memory_space<vmem>>, vector<1x32x32xf32>,
    %c1 = arith.constant 1 : index
    %c0_10 = arith.constant 0 : index
    %c0_11 = arith.constant 0 : index
    %9 = vector.load %arg2[%c1, %c0_10, %c0_11] : memref<4x16x16xf32, #tpu.memory_space<vmem>>, vector<1x16x16xf32>
    %10 = vector.shape_cast %9 : vector<1x16x16xf32> to vector<16x16xf32>
    %cst_12 = arith.constant dense<0.000000e+00> : vector<32x16xf32>
    %11 = tpu.matmul %0, %10, %cst_12 {dimension_numbers = #tpu.dot_dimension_numbers<[1], [0], [0], [1], [0, 0, 1, 1], [], []>} : vector<32x16xf32>, vector<16x16xf32>, vector<32x16xf32> -> vector<32x16xf32>
    %cst_13 = arith.constant dense<0.000000e+00> : vector<32x32xf32>
    %12 = tpu.matmul %11, %1, %cst_13 {dimension_numbers = #tpu.dot_dimension_numbers<[1], [0], [0], [1], [0, 0, 1, 1], [], []>} : vector<32x16xf32>, vector<16x32xf32>, vector<32x32xf32> -> vector<32x32xf32>
    %c1_14 = arith.constant 1 : index
    %c0_15 = arith.constant 0 : index
    %c0_16 = arith.constant 0 : index
    %13 = vector.load %arg5[%c1_14, %c0_15, %c0_16] : memref<4x32x32xf32, #tpu.memory_space<vmem>>, vector<1x32x32xf32>
    %14 = vector.shape_cast %13 : vector<1x32x32xf32> to vector<32x32xf32>
    %15 = vector.shape_cast %12 : vector<32x32xf32> to vector<1x32x32xf32>
    tpu.vector_store %arg5[%c1_14, %c0_15, %c0_16], %15 {strides = array<i32>} : memref<4x32x32xf32, #tpu.memory_space<vmem>>, vector<1x32x32xf32>,
    %c2 = arith.constant 2 : index
    %c0_17 = arith.constant 0 : index
    %c0_18 = arith.constant 0 : index
    %16 = vector.load %arg2[%c2, %c0_17, %c0_18] : memref<4x16x16xf32, #tpu.memory_space<vmem>>, vector<1x16x16xf32>
    %17 = vector.shape_cast %16 : vector<1x16x16xf32> to vector<16x16xf32>
    %cst_19 = arith.constant dense<0.000000e+00> : vector<32x16xf32>
    %18 = tpu.matmul %0, %17, %cst_19 {dimension_numbers = #tpu.dot_dimension_numbers<[1], [0], [0], [1], [0, 0, 1, 1], [], []>} : vector<32x16xf32>, vector<16x16xf32>, vector<32x16xf32> -> vector<32x16xf32>
    %cst_20 = arith.constant dense<0.000000e+00> : vector<32x32xf32>
    %19 = tpu.matmul %18, %1, %cst_20 {dimension_numbers = #tpu.dot_dimension_numbers<[1], [0], [0], [1], [0, 0, 1, 1], [], []>} : vector<32x16xf32>, vector<16x32xf32>, vector<32x32xf32> -> vector<32x32xf32>
    %c2_21 = arith.constant 2 : index
    %c0_22 = arith.constant 0 : index
    %c0_23 = arith.constant 0 : index
    %20 = vector.load %arg5[%c2_21, %c0_22, %c0_23] : memref<4x32x32xf32, #tpu.memory_space<vmem>>, vector<1x32x32xf32>
    %21 = vector.shape_cast %20 : vector<1x32x32xf32> to vector<32x32xf32>
    %22 = vector.shape_cast %19 : vector<32x32xf32> to vector<1x32x32xf32>
    tpu.vector_store %arg5[%c2_21, %c0_22, %c0_23], %22 {strides = array<i32>} : memref<4x32x32xf32, #tpu.memory_space<vmem>>, vector<1x32x32xf32>,
    %c3 = arith.constant 3 : index
    %c0_24 = arith.constant 0 : index
    %c0_25 = arith.constant 0 : index
    %23 = vector.load %arg2[%c3, %c0_24, %c0_25] : memref<4x16x16xf32, #tpu.memory_space<vmem>>, vector<1x16x16xf32>
    %24 = vector.shape_cast %23 : vector<1x16x16xf32> to vector<16x16xf32>
    %cst_26 = arith.constant dense<0.000000e+00> : vector<32x16xf32>
    %25 = tpu.matmul %0, %24, %cst_26 {dimension_numbers = #tpu.dot_dimension_numbers<[1], [0], [0], [1], [0, 0, 1, 1], [], []>} : vector<32x16xf32>, vector<16x16xf32>, vector<32x16xf32> -> vector<32x16xf32>
    %cst_27 = arith.constant dense<0.000000e+00> : vector<32x32xf32>
    %26 = tpu.matmul %25, %1, %cst_27 {dimension_numbers = #tpu.dot_dimension_numbers<[1], [0], [0], [1], [0, 0, 1, 1], [], []>} : vector<32x16xf32>, vector<16x32xf32>, vector<32x32xf32> -> vector<32x32xf32>
    %c3_28 = arith.constant 3 : index
    %c0_29 = arith.constant 0 : index
    %c0_30 = arith.constant 0 : index
    %27 = vector.load %arg5[%c3_28, %c0_29, %c0_30] : memref<4x32x32xf32, #tpu.memory_space<vmem>>, vector<1x32x32xf32>
    %28 = vector.shape_cast %27 : vector<1x32x32xf32> to vector<32x32xf32>
    %29 = vector.shape_cast %26 : vector<32x32xf32> to vector<1x32x32xf32>
    tpu.vector_store %arg5[%c3_28, %c0_29, %c0_30], %29 {strides = array<i32>} : memref<4x32x32xf32, #tpu.memory_space<vmem>>, vector<1x32x32xf32>,
    return
  }
  func.func @transform_0(%arg0: i32, %arg1: i32) -> (i32, i32, i32) {
    %c0_i32 = arith.constant 0 : i32
    %c0_i32_0 = arith.constant 0 : i32
    %c0_i32_1 = arith.constant 0 : i32
    return %arg0, %c0_i32, %c0_i32_0 : i32, i32, i32
  }
  func.func @transform_1(%arg0: i32, %arg1: i32) -> (i32, i32) {
    %c0_i32 = arith.constant 0 : i32
    %c0_i32_0 = arith.constant 0 : i32
    return %arg1, %c0_i32 : i32, i32
  }
  func.func @transform_2(%arg0: i32, %arg1: i32) -> (i32, i32) {
    %c0_i32 = arith.constant 0 : i32
    %c0_i32_0 = arith.constant 0 : i32
    %c0_i32_1 = arith.constant 0 : i32
    return %c0_i32, %c0_i32_0 : i32, i32
  }
  func.func @transform_3(%arg0: i32, %arg1: i32) -> (i32, i32, i32) {
    %c0_i32 = arith.constant 0 : i32
    %c0_i32_0 = arith.constant 0 : i32
    return %arg0, %arg1, %c0_i32 : i32, i32, i32
  }
}

</mosaic_0001>

<bundles_post_ra>
// kernel: tpu_custom_call.1
= control target key start
LH: loop header
LB: loop body
LE: loop exit
PB: predicated region body
PF: predicated region fallthrough
CT: control target
= control target key end

     0   :  { %8 = vsyncpa [#allocation3], 0  ;;  %s1161_s0 = inlined_call_operand.hbm [shape: f32[8,16,16], index: 0, kind: input, shape index: {}]   ;;  %s1162_s1 = inlined_call_operand.vmem [shape: f32[32,16], index: 1, kind: input, shape index: {}]   ;;  %s1163_s2 = inlined_call_operand.vmem [shape: f32[16,32], index: 2, kind: input, shape index: {}]   ;;  %s1164_s3 = inlined_call_operand.hbm [shape: f32[8,32,32], index: 3, kind: output, shape index: {}]  }
   0x1   :  { %10 = vsyncpa [#allocation3 + $0x1], 0 }
   0x2   :  { %11 = vsyncpa [#allocation4], 0 }
   0x3   :  { %13 = vsyncpa [#allocation4 + $0x1], 0  ;;  %s955_s12 = smov 0   ;;  %s957_s13 = smov 0  }
   0x4   :  { %s959_s14 = smov 0   ;;  %s961_s15 = smov 0  }
   0x5   :  { %s963_s16 = smov 0   ;;  %s965_s17 = smov 0  }
   0x6 LB: > { %s679_s18 = sadd.s32 4294967295, %s929_s17   ;;  %s680_s19 = sadd.s32 4294967294, %s929_s17   ;;  %s929_s17 = sphi %s965_s17, %s19_s17   ;;  %s925_s16 = sphi %s963_s16, %s1173_s16   ;;  %s921_s15 = sphi %s961_s15, %s1172_s15   ;;  %s917_s14 = sphi %s959_s14, %s1171_s14   ;;  %s913_s13 = sphi %s957_s13, %s1170_s13   ;;  %s909_s12 = sphi %s955_s12, %s1169_s12  }
   0x7   : > { %s31_s20 = sadd.s32 1, %s925_s16  ;;  %s38_s21 = sadd.s32 1, %s917_s14 }
   0x8   : > { %p33_p0 = scmp.ge.s32.totalorder %s31_s20, 2  ;;  %p45_p1 = scmp.ne.s32.totalorder %s917_s14, %s913_s13 }
   0x9   : > { %p46_p2 = scmp.eq.s32.totalorder %s929_s17, 0  ;;  %p51_p3 = scmp.ne.s32.totalorder %s913_s13, %s909_s12 }
   0xa   : > { %s1175_s20 = smov (%p33_p0, %s31_s20), 0  ;;  %p52_p5 = scmp.eq.s32.totalorder %s679_s18, 0 }
   0xb   : > { %p996_p4 = por %p46_p2, %p45_p1  ;;  %s35_s23 = ssub.s32 %s925_s16, %s1175_s20 }
   0xc   : > { %p124_p6 = scmp.eq.s32.totalorder %s679_s18, 1  ;;  %p36_p7 = scmp.eq.s32.totalorder %s35_s23, 0 }
   0xd   : > { %p1002_p8 = por %p52_p5, %p51_p3  ;;  %p130_p10 = scmp.eq.s32.totalorder %s680_s19, 1 }
   0xe   : > { %p1006_p9 = por %p124_p6, %p45_p1  ;;  %p683_p12 = scmp.ge.s32.totalorder %s929_s17, 2 }
   0xf   : > { %s1011_s26 = scalar_select %p36_p7, %s917_s14, %s38_s21  }
  0x10   : > { %p1013_p11 = por %p130_p10, %p51_p3  ;;  %p763_p13 = scmp.lt.s32.totalorder %s929_s17, 2 }
  0x11   : > { %s162_s28 = sand.u32 1, %s917_s14   ;;  %s748_s30 = sshll.u32 %s925_s16, 6 }
  0x12   : > { %s684_s29 = sshll.u32 %s162_s28, 6  ;;  %s172_s6 = scalar_lea.hbm %s1161_s0, %s748_s30 }
  0x13   : > { %s166_s7 = scalar_lea.vmem [#allocation2], %s684_s29  ;;  %s173_s9 = sshll.u32 %s172_s6, 4  ;;  %s174_s9 = int_to_ptr.hbm [resolvable:$true] %s173_s9 }
  0x14   : > { %s175_s8 = sshll.u32 %s166_s7, 4  ;;  %p756_p0 = pnand %p763_p13, %p996_p4  ;;  %s176_s8 = int_to_ptr.vmem [resolvable:$true] %s175_s8 }
  0x15   : > { %p688_p1 = scmp.ge.s32.totalorder %s929_s17, 1  ;;  %s163_s10 = scalar_lea.sflag [#allocation3], %s162_s28 }
  0x16   : > { %s931_s11 = smov 128   ;;  %s932_s18 = smov 8  }
  0x17   : > { %758 = dma.hbm_to_vmem [thread:$0]  (!%p756_p0), %s174_s9, 1024, %s176_s8, %s163_s10, %s931_s11, %s931_s11, %s932_s18  }
  0x18   : > { %p183_p2 = scmp.lt.s32.totalorder %s929_s17, 3 }
  0x1a   : > { %p184_p3 = pnand %p688_p1, %p183_p2 }
  0x1b   : > { %s1029_s19 = sand.u32 (!%p184_p3), 1, %s913_s13  }
  0x1c   : > { %187 = sbr.rel (%p184_p3) target bundleno = 362 (0x16a), region = 32  ;;  %s689_s21 = sshll.u32 (!%p184_p3), %s1029_s19, 6 }
  0x1d   : > { %s190_s23 = scalar_lea.sflag (!%p184_p3), [#allocation3], %s1029_s19  ;;  %s193_s29 = scalar_lea.vmem (!%p184_p3), [#allocation2], %s689_s21 }
  0x21   : > { %900 = dma.done.wait (%p1002_p8), %s190_s23, 1024  }
  0x22   : > { %902 = vsyncadd (%p1002_p8), %s190_s23, 4294966272  ;;  %v700_v0 = vld [vmem:[%s193_s29 + $0x18] sm:$0xff]  ;;  %v699_v1 = vld [vmem:[%s193_s29 + $0x10] sm:$0xff]  ;;  %vm239_vm0 = vcmask 130048   ;;  %s690_s18 = sshll.u32 %s1029_s19, 7  ;;  %vm322_vm1 = vcmask 261120  }
  0x23   : > { %344 = vmatpush.msra.mxu2 %v700_v0  ;;  %v231_v2 = vld [vmem:[%s1162_s1] sm:$0xff]  ;;  %v238_v3 = vld [vmem:[%s193_s29 + $0x8] sm:$0xff]  ;;  %v728_v4 = vld [vmem:[%s193_s29 + $0x38] sm:$0xff]  ;;  %s1088_s21 = scalar_lea.vmem [#allocation5], %s690_s18  ;;  %s750_s23 = sshll.u32 %s921_s15, 7 }
  0x24   : > { %266 = vmatpush.msra.mxu0 %v238_v3  ;;  %v237_v5 = vld [vmem:[%s193_s29] sm:$0xff]  ;;  %v714_v6 = vld [vmem:[%s193_s29 + $0x28] sm:$0xff]  ;;  %v727_v7 = vld [vmem:[%s193_s29 + $0x30] sm:$0xff]  ;;  %s576_s28 = scalar_lea.hbm %s1164_s3, %s750_s23  ;;  %s577_s24 = sshll.u32 %s1088_s21, 4  ;;  %s578_s24 = int_to_ptr.vmem [resolvable:$true] %s577_s24 }
  0x25   : > { %345 = vmatpush.msra.mxu2 %v699_v1  ;;  %v713_v8 = vld [vmem:[%s193_s29 + $0x20] sm:$0xff]  ;;  %v232_v9 = vld [vmem:[%s1162_s1 + $0x8] sm:$0xff]  ;;  %v233_v10 = vld [vmem:[%s1162_s1 + $0x10] sm:$0xff]  ;;  %s579_s30 = sshll.u32 %s576_s28, 4  ;;  %s562_s4 = scalar_lea.sflag [#allocation4], %s1029_s19  ;;  %s580_s30 = int_to_ptr.hbm [resolvable:$true] %s579_s30 }
  0x26   : > { %701 = vmatmul.msk.f32.vlgmr.msra.gmra.mxu2 %vm239_vm0, %v231_v2  ;;  %267 = vmatpush.msra.mxu0 %v237_v5  ;;  %v234_v11 = vld [vmem:[%s1162_s1 + $0x18] sm:$0xff]  ;;  %v236_v12 = vld [vmem:[%s1163_s2 + $0x8] sm:$0xff]  ;;  %v235_v13 = vld [vmem:[%s1163_s2] sm:$0xff]  ;;  %s861_s5 = sshra.s32 %s580_s30, 4  ;;  %s867_s8 = scalar_lea.hbm %s1164_s3, 256  ;;  %s862_s5 = int_to_ptr.hbm [resolvable:$true] %s861_s5 }
  0x27   : > { %500 = vmatpush.msrb.mxu2 %v728_v4  ;;  %691 = vmatmul.msk.f32.vlgmr.msra.gmra.mxu0 %vm239_vm0, %v231_v2  ;;  %s863_s15 = scalar_lea.hbm %s862_s5, 128  ;;  %p868_p7 = scmp.lt.s32.totalorder %s862_s5, %s1164_s3 }
  0x28   : > { %422 = vmatpush.msrb.mxu0 %v714_v6  ;;  %385 = vmatpush.msra.mxu3 %v236_v12  ;;  %p864_p4 = scmp.ne.s32.totalorder %s862_s5, %s863_s15  ;;  %p869_p8 = scmp.lt.s32.totalorder %s867_s8, %s863_s15 }
  0x29   : > { %501 = vmatpush.msrb.mxu2 %v727_v7  ;;  %307 = vmatpush.msra.mxu1 %v236_v12 }
  0x2a   : > { %423 = vmatpush.msrb.mxu0 %v713_v8  ;;  %386 = vmatpush.msra.mxu3 %v235_v13  ;;  %p865_p5 = pnand %p864_p4, %p1006_p9  ;;  %p870_p10 = por %p869_p8, %p868_p7 }
  0x2b   : > { %308 = vmatpush.msra.mxu1 %v235_v13 }
  0x2c   : > { %541 = vmatpush.msrb.mxu3 %v236_v12  ;;  %p866_p6 = pneg %p865_p5 }
  0x2d   : > { %463 = vmatpush.msrb.mxu1 %v236_v12 }
  0x2e   : > { %702 = vmatmul.msk.f32.gmra.mxu2 %vm239_vm0, %v232_v9  ;;  %542 = vmatpush.msrb.mxu3 %v235_v13  ;;  %p871_p13 = pnand %p870_p10, %p866_p6 }
  0x2f   : > { %692 = vmatmul.msk.f32.gmra.mxu0 %vm239_vm0, %v232_v9  ;;  %464 = vmatpush.msrb.mxu1 %v235_v13 }
  0x36   : > { %703 = vmatmul.msk.f32.gmra.mxu2 %vm239_vm0, %v233_v10 }
  0x37   : > { %693 = vmatmul.msk.f32.gmra.mxu0 %vm239_vm0, %v233_v10 }
  0x3e   : > { %704 = vmatmul.msk.f32.gmra.mxu2 %vm239_vm0, %v234_v11 }
  0x3f   : > { %694 = vmatmul.msk.f32.gmra.mxu0 %vm239_vm0, %v234_v11 }
  0x46   : > { %729 = vmatmul.msk.f32.vlgmr.msrb.gmra.mxu2 %vm239_vm0, %v231_v2 }
  0x47   : > { %715 = vmatmul.msk.f32.vlgmr.msrb.gmra.mxu0 %vm239_vm0, %v231_v2 }
  0x4e   : > { %730 = vmatmul.msk.f32.gmra.mxu2 %vm239_vm0, %v232_v9 }
  0x4f   : > { %716 = vmatmul.msk.f32.gmra.mxu0 %vm239_vm0, %v232_v9 }
  0x56   : > { %731 = vmatmul.msk.f32.gmra.mxu2 %vm239_vm0, %v233_v10 }
  0x57   : > { %717 = vmatmul.msk.f32.gmra.mxu0 %vm239_vm0, %v233_v10 }
  0x5e   : > { %732 = vmatmul.msk.f32.gmra.mxu2 %vm239_vm0, %v234_v11 }
  0x5f   : > { %718 = vmatmul.msk.f32.gmra.mxu0 %vm239_vm0, %v234_v11 }
  0xa4   : > { %v269_v14 = vpop.f32.mrf.mxu0 }
  0xa5   : > { %695 = vmatmul.msk.f32.vlgmr.msra.gmra.mxu1 %vm239_vm0, %v269_v14 }
  0xa9   : > { %v347_v15 = vpop.f32.mrf.mxu2 }
  0xaa   : > { %705 = vmatmul.msk.f32.vlgmr.msra.gmra.mxu3 %vm239_vm0, %v347_v15 }
  0xac   : > { %v272_v16 = vpop.f32.mrf.mxu0 }
  0xad   : > { %696 = vmatmul.msk.f32.gmra.mxu1 %vm239_vm0, %v272_v16 }
  0xb1   : > { %v350_v17 = vpop.f32.mrf.mxu2 }
  0xb2   : > { %706 = vmatmul.msk.f32.gmra.mxu3 %vm239_vm0, %v350_v17 }
  0xb4   : > { %v275_v18 = vpop.f32.mrf.mxu0 }
  0xb5   : > { %697 = vmatmul.msk.f32.gmra.mxu1 %vm239_vm0, %v275_v18 }
  0xb9   : > { %v353_v19 = vpop.f32.mrf.mxu2 }
  0xba   : > { %707 = vmatmul.msk.f32.gmra.mxu3 %vm239_vm0, %v353_v19 }
  0xbc   : > { %v278_v20 = vpop.f32.mrf.mxu0 }
  0xbd   : > { %698 = vmatmul.msk.f32.gmra.mxu1 %vm239_vm0, %v278_v20 }
  0xc1   : > { %v356_v21 = vpop.f32.mrf.mxu2 }
  0xc2   : > { %708 = vmatmul.msk.f32.gmra.mxu3 %vm239_vm0, %v356_v21 }
  0xc4   : > { %v425_v22 = vpop.f32.mrf.mxu0 }
  0xc5   : > { %719 = vmatmul.msk.f32.vlgmr.msrb.gmra.mxu1 %vm239_vm0, %v425_v22 }
  0xc9   : > { %v503_v23 = vpop.f32.mrf.mxu2 }
  0xca   : > { %733 = vmatmul.msk.f32.vlgmr.msrb.gmra.mxu3 %vm239_vm0, %v503_v23 }
  0xcc   : > { %v428_v24 = vpop.f32.mrf.mxu0 }
  0xcd   : > { %720 = vmatmul.msk.f32.gmra.mxu1 %vm239_vm0, %v428_v24 }
  0xd1   : > { %v506_v25 = vpop.f32.mrf.mxu2 }
  0xd2   : > { %734 = vmatmul.msk.f32.gmra.mxu3 %vm239_vm0, %v506_v25 }
  0xd4   : > { %v431_v26 = vpop.f32.mrf.mxu0 }
  0xd5   : > { %721 = vmatmul.msk.f32.gmra.mxu1 %vm239_vm0, %v431_v26 }
  0xd9   : > { %v509_v27 = vpop.f32.mrf.mxu2 }
  0xda   : > { %735 = vmatmul.msk.f32.gmra.mxu3 %vm239_vm0, %v509_v27 }
  0xdc   : > { %v434_v28 = vpop.f32.mrf.mxu0 }
  0xdd   : > { %722 = vmatmul.msk.f32.gmra.mxu1 %vm239_vm0, %v434_v28 }
  0xe1   : > { %v512_v29 = vpop.f32.mrf.mxu2 }
  0xe2   : > { %736 = vmatmul.msk.f32.gmra.mxu3 %vm239_vm0, %v512_v29 }
 0x122   : > { %v310_v30 = vpop.f32.mrf.mxu1 }
 0x123   : > { %323 = vst.msk [vmem:[%s1088_s21] sm:$0xff] %vm322_vm1, %v310_v30 }
 0x12a   : > { %v313_v31 = vpop.f32.mrf.mxu1 }
 0x12b   : > { %324 = vst.msk [vmem:[%s1088_s21 + $0x8] sm:$0xff] %vm322_vm1, %v313_v31 }
 0x12d   : > { %v388_v32 = vpop.f32.mrf.mxu3 }
 0x12e   : > { %709 = vst.msk [vmem:[%s1088_s21 + $0x20] sm:$0xff] %vm322_vm1, %v388_v32 }
 0x132   : > { %v316_v33 = vpop.f32.mrf.mxu1 }
 0x133   : > { %325 = vst.msk [vmem:[%s1088_s21 + $0x10] sm:$0xff] %vm322_vm1, %v316_v33 }
 0x135   : > { %v391_v34 = vpop.f32.mrf.mxu3 }
 0x136   : > { %710 = vst.msk [vmem:[%s1088_s21 + $0x28] sm:$0xff] %vm322_vm1, %v391_v34 }
 0x13a   : > { %v319_v35 = vpop.f32.mrf.mxu1 }
 0x13b   : > { %326 = vst.msk [vmem:[%s1088_s21 + $0x18] sm:$0xff] %vm322_vm1, %v319_v35 }
 0x13d   : > { %v394_v36 = vpop.f32.mrf.mxu3 }
 0x13e   : > { %711 = vst.msk [vmem:[%s1088_s21 + $0x30] sm:$0xff] %vm322_vm1, %v394_v36 }
 0x142   : > { %v466_v37 = vpop.f32.mrf.mxu1 }
 0x143   : > { %723 = vst.msk [vmem:[%s1088_s21 + $0x40] sm:$0xff] %vm322_vm1, %v466_v37 }
 0x145   : > { %v397_v38 = vpop.f32.mrf.mxu3 }
 0x146   : > { %712 = vst.msk [vmem:[%s1088_s21 + $0x38] sm:$0xff] %vm322_vm1, %v397_v38 }
 0x14a   : > { %v469_v39 = vpop.f32.mrf.mxu1 }
 0x14b   : > { %724 = vst.msk [vmem:[%s1088_s21 + $0x48] sm:$0xff] %vm322_vm1, %v469_v39 }
 0x14d   : > { %v544_v40 = vpop.f32.mrf.mxu3 }
 0x14e   : > { %737 = vst.msk [vmem:[%s1088_s21 + $0x60] sm:$0xff] %vm322_vm1, %v544_v40 }
 0x152   : > { %v472_v41 = vpop.f32.mrf.mxu1 }
 0x153   : > { %725 = vst.msk [vmem:[%s1088_s21 + $0x50] sm:$0xff] %vm322_vm1, %v472_v41 }
 0x155   : > { %v547_v42 = vpop.f32.mrf.mxu3 }
 0x156   : > { %738 = vst.msk [vmem:[%s1088_s21 + $0x68] sm:$0xff] %vm322_vm1, %v547_v42 }
 0x15a   : > { %v475_v43 = vpop.f32.mrf.mxu1 }
 0x15b   : > { %726 = vst.msk [vmem:[%s1088_s21 + $0x58] sm:$0xff] %vm322_vm1, %v475_v43 }
 0x15d   : > { %v550_v44 = vpop.f32.mrf.mxu3 }
 0x15e   : > { %739 = vst.msk [vmem:[%s1088_s21 + $0x70] sm:$0xff] %vm322_vm1, %v550_v44 }
 0x165   : > { %v553_v45 = vpop.f32.mrf.mxu3 }
 0x166   : > { %740 = vst.msk [vmem:[%s1088_s21 + $0x78] sm:$0xff] %vm322_vm1, %v553_v45 }
 0x167   : > { %874 = shalt.err (!%p871_p13)
}
 0x168   : > { %s933_s19 = smov 128   ;;  %s934_s11 = smov 8  }
 0x169   : > { %753 = dma.vmem_to_hbm [thread:$0]  (%p1006_p9), %s578_s24, 2048, %s580_s30, %s562_s4, %s933_s19, %s933_s19, %s934_s11  }
 0x16a PF: > { %s594_s18 = sand.u32 1, %s909_s12   ;;  %p760_p0 = pnand %p683_p12, %p1013_p11 }
 0x16b   : > { %s595_s21 = scalar_lea.sflag [#allocation4], %s594_s18 }
 0x16c   : > { %p761_p1 = pneg %p760_p0 }
 0x16e   : > { %904 = dma.done.wait (%p761_p1), %s595_s21, 2048  }
 0x16f   : > { %906 = vsyncadd (%p761_p1), %s595_s21, 4294965248  ;;  %s19_s17 = sadd.s32 1, %s929_s17   ;;  %s1169_s12 = smov %s913_s13 }
 0x170   : > { %p16_p2 = scmp.ge.s32.totalorder %s19_s17, 4   ;;  %s1170_s13 = smov %s917_s14 }
 0x171   : > { %s1171_s14 = smov %s1011_s26  ;;  %s1172_s15 = smov %s925_s16 }
 0x172   : > { %s1173_s16 = smov %s1175_s20  ;;  %18 = sbr.rel (!%p16_p2) target bundleno = 6 (0x6), region = 86 }
 0x177   :  { %601 = vsyncpa [#allocation3], 1 }
 0x178   :  { %603 = vsyncpa [#allocation3 + $0x1], 1 }
 0x179   :  { %604 = vsyncpa [#allocation4], 1 }
 0x17a   :  { %606 = vsyncpa [#allocation4 + $0x1], 1 }

</bundles_post_ra>
